<compile_context>
chip_gen: v7x
topology: tpu7x:2x2x1
jax: 0.10.0
libtpu: 0.0.40
codegen_flags: <defaults>
</compile_context>

<pallas_src>
import jax
import jax.numpy as jnp
from jax.experimental import pallas as pl
from jax.experimental.pallas import tpu as pltpu


def _lstm_kernel(x_ref, wih_ref, whh_ref, b_ref, wlin_ref, blin_ref,
                 out_ref, hseq_ref):
    """Full-sequence LSTM recurrence + linear head in one kernel call.

    x_ref    : (T, I)   VMEM
    wih_ref  : (I, 4H)  VMEM
    whh_ref  : (H, 4H)  VMEM
    b_ref    : (1, 4H)  VMEM   (bias_ih + bias_hh, pre-summed)
    wlin_ref : (H, O)   VMEM
    blin_ref : (1, O)   VMEM
    out_ref  : (T, O)   VMEM   predictions
    hseq_ref : (T, H)   VMEM   scratch holding all hidden states
    """
    T = x_ref.shape[0]
    H = whh_ref.shape[0]

    # ---- 1) Hoisted input projection + bias (no recurrent dependency). ----
    # (T, 4H) fits in a vreg-sized value at these shapes; keep it in registers.
    gx = (jnp.dot(x_ref[...], wih_ref[...],
                  preferred_element_type=jnp.float32)
          + b_ref[...])                                  # (T, 4H)

    # Recurrent weight loaded once and held across the unrolled loop.
    whh = whh_ref[...]                                   # (H, 4H)

    # ---- 2) Fully-unrolled recurrence (static T, static slice indices). ----
    h = jnp.zeros((1, H), jnp.float32)
    c = jnp.zeros((1, H), jnp.float32)
    for t in range(T):
        gates = gx[t:t + 1, :] + jnp.dot(h, whh,
                                         preferred_element_type=jnp.float32)
        # Full-width nonlinearities once per step (EUP), then static lane
        # slices for the four gate segments.
        sig = jax.nn.sigmoid(gates)                      # (1, 4H)
        tnh = jnp.tanh(gates)                            # (1, 4H)
        i_g = sig[:, 0 * H:1 * H]
        f_g = sig[:, 1 * H:2 * H]
        g_g = tnh[:, 2 * H:3 * H]
        o_g = sig[:, 3 * H:4 * H]
        c = f_g * c + i_g * g_g
        h = o_g * jnp.tanh(c)
        hseq_ref[t:t + 1, :] = h

    # ---- 3) Linear head over all time steps at once. ----
    out_ref[...] = (jnp.dot(hseq_ref[...], wlin_ref[...],
                            preferred_element_type=jnp.float32)
                    + blin_ref[...])


def lstm_forward(x, wih, whh, b_ih, b_hh, w_lin, b_lin):
    """x: (T, input_size) f32. Weights in PyTorch layout:
       wih: (4H, I), whh: (4H, H), b_ih/b_hh: (4H,), w_lin: (O, H), b_lin: (O,)."""
    T, _ = x.shape
    H = whh.shape[1]
    O = w_lin.shape[0]

    # Pre-transpose so every in-kernel matmul is row-major (x @ W^T form),
    # and fold the two biases into one vector (added once, pre-loop).
    wih_t = jnp.asarray(wih, jnp.float32).T              # (I, 4H)
    whh_t = jnp.asarray(whh, jnp.float32).T              # (H, 4H)
    b = (jnp.asarray(b_ih, jnp.float32)
         + jnp.asarray(b_hh, jnp.float32)).reshape(1, 4 * H)
    wlin_t = jnp.asarray(w_lin, jnp.float32).T           # (H, O)
    blin = jnp.asarray(b_lin, jnp.float32).reshape(1, O)

    vmem = pl.BlockSpec(memory_space=pltpu.MemorySpace.VMEM)
    return pl.pallas_call(
        _lstm_kernel,
        out_shape=jax.ShapeDtypeStruct((T, O), jnp.float32),
        in_specs=[vmem] * 6,
        out_specs=vmem,
        scratch_shapes=[pltpu.VMEM((T, H), jnp.float32)],
    )(x.astype(jnp.float32), wih_t, whh_t, b, wlin_t, blin)


def _reference_forward(x, wih, whh, b_ih, b_hh, w_lin, b_lin):
    """Pure-JAX reference matching nn.LSTM (batch=1) + nn.Linear."""
    H = whh.shape[1]

    def step(carry, x_t):
        h, c = carry
        gates = x_t @ wih.T + b_ih + h @ whh.T + b_hh
        i = jax.nn.sigmoid(gates[0 * H:1 * H])
        f = jax.nn.sigmoid(gates[1 * H:2 * H])
        g = jnp.tanh(gates[2 * H:3 * H])
        o = jax.nn.sigmoid(gates[3 * H:4 * H])
        c = f * c + i * g
        h = o * jnp.tanh(c)
        return (h, c), h

    h0 = jnp.zeros((H,), jnp.float32)
    (_, _), hs = jax.lax.scan(step, (h0, h0), x)
    return hs @ w_lin.T + b_lin


if __name__ == "__main__":
    INPUT_SIZE, HIDDEN, OUTPUT = 3, 32, 1
    T = 8

    key = jax.random.PRNGKey(0)
    ks = jax.random.split(key, 7)
    k = 1.0 / jnp.sqrt(HIDDEN)

    # PyTorch-style uniform(-1/sqrt(H), 1/sqrt(H)) init, deterministic.
    wih = jax.random.uniform(ks[0], (4 * HIDDEN, INPUT_SIZE), jnp.float32, -k, k)
    whh = jax.random.uniform(ks[1], (4 * HIDDEN, HIDDEN), jnp.float32, -k, k)
    b_ih = jax.random.uniform(ks[2], (4 * HIDDEN,), jnp.float32, -k, k)
    b_hh = jax.random.uniform(ks[3], (4 * HIDDEN,), jnp.float32, -k, k)
    w_lin = jax.random.uniform(ks[4], (OUTPUT, HIDDEN), jnp.float32, -k, k)
    b_lin = jax.random.uniform(ks[5], (OUTPUT,), jnp.float32, -k, k)

    x = jax.random.normal(ks[6], (T, INPUT_SIZE), jnp.float32)

    preds = lstm_forward(x, wih, whh, b_ih, b_hh, w_lin, b_lin)
    preds = jax.block_until_ready(preds)

    ref = _reference_forward(x, wih, whh, b_ih, b_hh, w_lin, b_lin)
    assert preds.shape == (T, OUTPUT)
    assert jnp.allclose(preds, ref, atol=1e-5, rtol=1e-5), (
        f"max err {jnp.max(jnp.abs(preds - ref))}")

    print("KERNEL_OK")
</pallas_src>

<mosaic_0001>
module attributes {stable_mosaic.version = 11 : i64} {
  func.func @_lstm_kernel(%arg0: memref<8x3xf32, #tpu.memory_space<vmem>>, %arg1: memref<3x128xf32, #tpu.memory_space<vmem>>, %arg2: memref<32x128xf32, #tpu.memory_space<vmem>>, %arg3: memref<1x128xf32, #tpu.memory_space<vmem>>, %arg4: memref<32x1xf32, #tpu.memory_space<vmem>>, %arg5: memref<1x1xf32, #tpu.memory_space<vmem>>, %arg6: memref<8x1xf32, #tpu.memory_space<vmem>>, %arg7: memref<8x32xf32, #tpu.memory_space<vmem>>) attributes {dimension_semantics = [], scalar_prefetch = 0 : i64, scratch_operands = 1 : i64, tpu.core_type = #tpu.core_type<tc>} {
    %c0 = arith.constant 0 : index
    %c0_0 = arith.constant 0 : index
    %0 = vector.load %arg0[%c0, %c0_0] : memref<8x3xf32, #tpu.memory_space<vmem>>, vector<8x3xf32>
    %c0_1 = arith.constant 0 : index
    %c0_2 = arith.constant 0 : index
    %1 = vector.load %arg1[%c0_1, %c0_2] : memref<3x128xf32, #tpu.memory_space<vmem>>, vector<3x128xf32>
    %cst = arith.constant dense<0.000000e+00> : vector<8x128xf32>
    %2 = tpu.matmul %0, %1, %cst {dimension_numbers = #tpu.dot_dimension_numbers<[1], [0], [0], [1], [0, 0, 1, 1], [], []>} : vector<8x3xf32>, vector<3x128xf32>, vector<8x128xf32> -> vector<8x128xf32>
    %c0_3 = arith.constant 0 : index
    %c0_4 = arith.constant 0 : index
    %3 = vector.load %arg3[%c0_3, %c0_4] : memref<1x128xf32, #tpu.memory_space<vmem>>, vector<1x128xf32>
    %4 = vector.broadcast %3 : vector<1x128xf32> to vector<8x128xf32>
    %5 = arith.addf %2, %4 : vector<8x128xf32>
    %c0_5 = arith.constant 0 : index
    %c0_6 = arith.constant 0 : index
    %6 = vector.load %arg2[%c0_5, %c0_6] : memref<32x128xf32, #tpu.memory_space<vmem>>, vector<32x128xf32>
    %cst_7 = arith.constant 0.000000e+00 : f32
    %7 = vector.broadcast %cst_7 : f32 to vector<1x32xf32>
    %cst_8 = arith.constant 0.000000e+00 : f32
    %8 = vector.broadcast %cst_8 : f32 to vector<1x32xf32>
    %9 = vector.extract_strided_slice %5 {offsets = [0, 0], sizes = [1, 128], strides = [1, 1]} : vector<8x128xf32> to vector<1x128xf32>
    %cst_9 = arith.constant dense<0.000000e+00> : vector<1x128xf32>
    %10 = tpu.matmul %7, %6, %cst_9 {dimension_numbers = #tpu.dot_dimension_numbers<[1], [0], [0], [1], [0, 0, 1, 1], [], []>} : vector<1x32xf32>, vector<32x128xf32>, vector<1x128xf32> -> vector<1x128xf32>
    %11 = arith.addf %9, %10 : vector<1x128xf32>
    %12 = arith.negf %11 : vector<1x128xf32>
    %13 = math.exp %12 : vector<1x128xf32>
    %cst_10 = arith.constant 1.000000e+00 : f32
    %14 = vector.broadcast %cst_10 : f32 to vector<1x128xf32>
    %15 = arith.addf %14, %13 : vector<1x128xf32>
    %16 = arith.divf %14, %15 : vector<1x128xf32>
    %17 = math.tanh %11 : vector<1x128xf32>
    %18 = vector.extract_strided_slice %16 {offsets = [0, 0], sizes = [1, 32], strides = [1, 1]} : vector<1x128xf32> to vector<1x32xf32>
    %19 = vector.extract_strided_slice %16 {offsets = [0, 32], sizes = [1, 32], strides = [1, 1]} : vector<1x128xf32> to vector<1x32xf32>
    %20 = vector.extract_strided_slice %17 {offsets = [0, 64], sizes = [1, 32], strides = [1, 1]} : vector<1x128xf32> to vector<1x32xf32>
    %21 = vector.extract_strided_slice %16 {offsets = [0, 96], sizes = [1, 32], strides = [1, 1]} : vector<1x128xf32> to vector<1x32xf32>
    %22 = arith.mulf %19, %8 : vector<1x32xf32>
    %23 = arith.mulf %18, %20 : vector<1x32xf32>
    %24 = arith.addf %22, %23 : vector<1x32xf32>
    %25 = math.tanh %24 : vector<1x32xf32>
    %26 = arith.mulf %21, %25 : vector<1x32xf32>
    %c0_11 = arith.constant 0 : index
    %c0_12 = arith.constant 0 : index
    %27 = vector.load %arg7[%c0_11, %c0_12] : memref<8x32xf32, #tpu.memory_space<vmem>>, vector<1x32xf32>
    tpu.vector_store %arg7[%c0_11, %c0_12], %26 {strides = array<i32>} : memref<8x32xf32, #tpu.memory_space<vmem>>, vector<1x32xf32>,
    %28 = vector.extract_strided_slice %5 {offsets = [1, 0], sizes = [1, 128], strides = [1, 1]} : vector<8x128xf32> to vector<1x128xf32>
    %cst_13 = arith.constant dense<0.000000e+00> : vector<1x128xf32>
    %29 = tpu.matmul %26, %6, %cst_13 {dimension_numbers = #tpu.dot_dimension_numbers<[1], [0], [0], [1], [0, 0, 1, 1], [], []>} : vector<1x32xf32>, vector<32x128xf32>, vector<1x128xf32> -> vector<1x128xf32>
    %30 = arith.addf %28, %29 : vector<1x128xf32>
    %31 = arith.negf %30 : vector<1x128xf32>
    %32 = math.exp %31 : vector<1x128xf32>
    %cst_14 = arith.constant 1.000000e+00 : f32
    %33 = vector.broadcast %cst_14 : f32 to vector<1x128xf32>
    %34 = arith.addf %33, %32 : vector<1x128xf32>
    %35 = arith.divf %33, %34 : vector<1x128xf32>
    %36 = math.tanh %30 : vector<1x128xf32>
    %37 = vector.extract_strided_slice %35 {offsets = [0, 0], sizes = [1, 32], strides = [1, 1]} : vector<1x128xf32> to vector<1x32xf32>
    %38 = vector.extract_strided_slice %35 {offsets = [0, 32], sizes = [1, 32], strides = [1, 1]} : vector<1x128xf32> to vector<1x32xf32>
    %39 = vector.extract_strided_slice %36 {offsets = [0, 64], sizes = [1, 32], strides = [1, 1]} : vector<1x128xf32> to vector<1x32xf32>
    %40 = vector.extract_strided_slice %35 {offsets = [0, 96], sizes = [1, 32], strides = [1, 1]} : vector<1x128xf32> to vector<1x32xf32>
    %41 = arith.mulf %38, %24 : vector<1x32xf32>
    %42 = arith.mulf %37, %39 : vector<1x32xf32>
    %43 = arith.addf %41, %42 : vector<1x32xf32>
    %44 = math.tanh %43 : vector<1x32xf32>
    %45 = arith.mulf %40, %44 : vector<1x32xf32>
    %c1 = arith.constant 1 : index
    %c0_15 = arith.constant 0 : index
    %46 = vector.load %arg7[%c1, %c0_15] : memref<8x32xf32, #tpu.memory_space<vmem>>, vector<1x32xf32>
    tpu.vector_store %arg7[%c1, %c0_15], %45 {strides = array<i32>} : memref<8x32xf32, #tpu.memory_space<vmem>>, vector<1x32xf32>,
    %47 = vector.extract_strided_slice %5 {offsets = [2, 0], sizes = [1, 128], strides = [1, 1]} : vector<8x128xf32> to vector<1x128xf32>
    %cst_16 = arith.constant dense<0.000000e+00> : vector<1x128xf32>
    %48 = tpu.matmul %45, %6, %cst_16 {dimension_numbers = #tpu.dot_dimension_numbers<[1], [0], [0], [1], [0, 0, 1, 1], [], []>} : vector<1x32xf32>, vector<32x128xf32>, vector<1x128xf32> -> vector<1x128xf32>
    %49 = arith.addf %47, %48 : vector<1x128xf32>
    %50 = arith.negf %49 : vector<1x128xf32>
    %51 = math.exp %50 : vector<1x128xf32>
    %cst_17 = arith.constant 1.000000e+00 : f32
    %52 = vector.broadcast %cst_17 : f32 to vector<1x128xf32>
    %53 = arith.addf %52, %51 : vector<1x128xf32>
    %54 = arith.divf %52, %53 : vector<1x128xf32>
    %55 = math.tanh %49 : vector<1x128xf32>
    %56 = vector.extract_strided_slice %54 {offsets = [0, 0], sizes = [1, 32], strides = [1, 1]} : vector<1x128xf32> to vector<1x32xf32>
    %57 = vector.extract_strided_slice %54 {offsets = [0, 32], sizes = [1, 32], strides = [1, 1]} : vector<1x128xf32> to vector<1x32xf32>
    %58 = vector.extract_strided_slice %55 {offsets = [0, 64], sizes = [1, 32], strides = [1, 1]} : vector<1x128xf32> to vector<1x32xf32>
    %59 = vector.extract_strided_slice %54 {offsets = [0, 96], sizes = [1, 32], strides = [1, 1]} : vector<1x128xf32> to vector<1x32xf32>
    %60 = arith.mulf %57, %43 : vector<1x32xf32>
    %61 = arith.mulf %56, %58 : vector<1x32xf32>
    %62 = arith.addf %60, %61 : vector<1x32xf32>
    %63 = math.tanh %62 : vector<1x32xf32>
    %64 = arith.mulf %59, %63 : vector<1x32xf32>
    %c2 = arith.constant 2 : index
    %c0_18 = arith.constant 0 : index
    %65 = vector.load %arg7[%c2, %c0_18] : memref<8x32xf32, #tpu.memory_space<vmem>>, vector<1x32xf32>
    tpu.vector_store %arg7[%c2, %c0_18], %64 {strides = array<i32>} : memref<8x32xf32, #tpu.memory_space<vmem>>, vector<1x32xf32>,
    %66 = vector.extract_strided_slice %5 {offsets = [3, 0], sizes = [1, 128], strides = [1, 1]} : vector<8x128xf32> to vector<1x128xf32>
    %cst_19 = arith.constant dense<0.000000e+00> : vector<1x128xf32>
    %67 = tpu.matmul %64, %6, %cst_19 {dimension_numbers = #tpu.dot_dimension_numbers<[1], [0], [0], [1], [0, 0, 1, 1], [], []>} : vector<1x32xf32>, vector<32x128xf32>, vector<1x128xf32> -> vector<1x128xf32>
    %68 = arith.addf %66, %67 : vector<1x128xf32>
    %69 = arith.negf %68 : vector<1x128xf32>
    %70 = math.exp %69 : vector<1x128xf32>
    %cst_20 = arith.constant 1.000000e+00 : f32
    %71 = vector.broadcast %cst_20 : f32 to vector<1x128xf32>
    %72 = arith.addf %71, %70 : vector<1x128xf32>
    %73 = arith.divf %71, %72 : vector<1x128xf32>
    %74 = math.tanh %68 : vector<1x128xf32>
    %75 = vector.extract_strided_slice %73 {offsets = [0, 0], sizes = [1, 32], strides = [1, 1]} : vector<1x128xf32> to vector<1x32xf32>
    %76 = vector.extract_strided_slice %73 {offsets = [0, 32], sizes = [1, 32], strides = [1, 1]} : vector<1x128xf32> to vector<1x32xf32>
    %77 = vector.extract_strided_slice %74 {offsets = [0, 64], sizes = [1, 32], strides = [1, 1]} : vector<1x128xf32> to vector<1x32xf32>
    %78 = vector.extract_strided_slice %73 {offsets = [0, 96], sizes = [1, 32], strides = [1, 1]} : vector<1x128xf32> to vector<1x32xf32>
    %79 = arith.mulf %76, %62 : vector<1x32xf32>
    %80 = arith.mulf %75, %77 : vector<1x32xf32>
    %81 = arith.addf %79, %80 : vector<1x32xf32>
    %82 = math.tanh %81 : vector<1x32xf32>
    %83 = arith.mulf %78, %82 : vector<1x32xf32>
    %c3 = arith.constant 3 : index
    %c0_21 = arith.constant 0 : index
    %84 = vector.load %arg7[%c3, %c0_21] : memref<8x32xf32, #tpu.memory_space<vmem>>, vector<1x32xf32>
    tpu.vector_store %arg7[%c3, %c0_21], %83 {strides = array<i32>} : memref<8x32xf32, #tpu.memory_space<vmem>>, vector<1x32xf32>,
    %85 = vector.extract_strided_slice %5 {offsets = [4, 0], sizes = [1, 128], strides = [1, 1]} : vector<8x128xf32> to vector<1x128xf32>
    %cst_22 = arith.constant dense<0.000000e+00> : vector<1x128xf32>
    %86 = tpu.matmul %83, %6, %cst_22 {dimension_numbers = #tpu.dot_dimension_numbers<[1], [0], [0], [1], [0, 0, 1, 1], [], []>} : vector<1x32xf32>, vector<32x128xf32>, vector<1x128xf32> -> vector<1x128xf32>
    %87 = arith.addf %85, %86 : vector<1x128xf32>
    %88 = arith.negf %87 : vector<1x128xf32>
    %89 = math.exp %88 : vector<1x128xf32>
    %cst_23 = arith.constant 1.000000e+00 : f32
    %90 = vector.broadcast %cst_23 : f32 to vector<1x128xf32>
    %91 = arith.addf %90, %89 : vector<1x128xf32>
    %92 = arith.divf %90, %91 : vector<1x128xf32>
    %93 = math.tanh %87 : vector<1x128xf32>
    %94 = vector.extract_strided_slice %92 {offsets = [0, 0], sizes = [1, 32], strides = [1, 1]} : vector<1x128xf32> to vector<1x32xf32>
    %95 = vector.extract_strided_slice %92 {offsets = [0, 32], sizes = [1, 32], strides = [1, 1]} : vector<1x128xf32> to vector<1x32xf32>
    %96 = vector.extract_strided_slice %93 {offsets = [0, 64], sizes = [1, 32], strides = [1, 1]} : vector<1x128xf32> to vector<1x32xf32>
    %97 = vector.extract_strided_slice %92 {offsets = [0, 96], sizes = [1, 32], strides = [1, 1]} : vector<1x128xf32> to vector<1x32xf32>
    %98 = arith.mulf %95, %81 : vector<1x32xf32>
    %99 = arith.mulf %94, %96 : vector<1x32xf32>
    %100 = arith.addf %98, %99 : vector<1x32xf32>
    %101 = math.tanh %100 : vector<1x32xf32>
    %102 = arith.mulf %97, %101 : vector<1x32xf32>
    %c4 = arith.constant 4 : index
    %c0_24 = arith.constant 0 : index
    %103 = vector.load %arg7[%c4, %c0_24] : memref<8x32xf32, #tpu.memory_space<vmem>>, vector<1x32xf32>
    tpu.vector_store %arg7[%c4, %c0_24], %102 {strides = array<i32>} : memref<8x32xf32, #tpu.memory_space<vmem>>, vector<1x32xf32>,
    %104 = vector.extract_strided_slice %5 {offsets = [5, 0], sizes = [1, 128], strides = [1, 1]} : vector<8x128xf32> to vector<1x128xf32>
    %cst_25 = arith.constant dense<0.000000e+00> : vector<1x128xf32>
    %105 = tpu.matmul %102, %6, %cst_25 {dimension_numbers = #tpu.dot_dimension_numbers<[1], [0], [0], [1], [0, 0, 1, 1], [], []>} : vector<1x32xf32>, vector<32x128xf32>, vector<1x128xf32> -> vector<1x128xf32>
    %106 = arith.addf %104, %105 : vector<1x128xf32>
    %107 = arith.negf %106 : vector<1x128xf32>
    %108 = math.exp %107 : vector<1x128xf32>
    %cst_26 = arith.constant 1.000000e+00 : f32
    %109 = vector.broadcast %cst_26 : f32 to vector<1x128xf32>
    %110 = arith.addf %109, %108 : vector<1x128xf32>
    %111 = arith.divf %109, %110 : vector<1x128xf32>
    %112 = math.tanh %106 : vector<1x128xf32>
    %113 = vector.extract_strided_slice %111 {offsets = [0, 0], sizes = [1, 32], strides = [1, 1]} : vector<1x128xf32> to vector<1x32xf32>
    %114 = vector.extract_strided_slice %111 {offsets = [0, 32], sizes = [1, 32], strides = [1, 1]} : vector<1x128xf32> to vector<1x32xf32>
    %115 = vector.extract_strided_slice %112 {offsets = [0, 64], sizes = [1, 32], strides = [1, 1]} : vector<1x128xf32> to vector<1x32xf32>
    %116 = vector.extract_strided_slice %111 {offsets = [0, 96], sizes = [1, 32], strides = [1, 1]} : vector<1x128xf32> to vector<1x32xf32>
    %117 = arith.mulf %114, %100 : vector<1x32xf32>
    %118 = arith.mulf %113, %115 : vector<1x32xf32>
    %119 = arith.addf %117, %118 : vector<1x32xf32>
    %120 = math.tanh %119 : vector<1x32xf32>
    %121 = arith.mulf %116, %120 : vector<1x32xf32>
    %c5 = arith.constant 5 : index
    %c0_27 = arith.constant 0 : index
    %122 = vector.load %arg7[%c5, %c0_27] : memref<8x32xf32, #tpu.memory_space<vmem>>, vector<1x32xf32>
    tpu.vector_store %arg7[%c5, %c0_27], %121 {strides = array<i32>} : memref<8x32xf32, #tpu.memory_space<vmem>>, vector<1x32xf32>,
    %123 = vector.extract_strided_slice %5 {offsets = [6, 0], sizes = [1, 128], strides = [1, 1]} : vector<8x128xf32> to vector<1x128xf32>
    %cst_28 = arith.constant dense<0.000000e+00> : vector<1x128xf32>
    %124 = tpu.matmul %121, %6, %cst_28 {dimension_numbers = #tpu.dot_dimension_numbers<[1], [0], [0], [1], [0, 0, 1, 1], [], []>} : vector<1x32xf32>, vector<32x128xf32>, vector<1x128xf32> -> vector<1x128xf32>
    %125 = arith.addf %123, %124 : vector<1x128xf32>
    %126 = arith.negf %125 : vector<1x128xf32>
    %127 = math.exp %126 : vector<1x128xf32>
    %cst_29 = arith.constant 1.000000e+00 : f32
    %128 = vector.broadcast %cst_29 : f32 to vector<1x128xf32>
    %129 = arith.addf %128, %127 : vector<1x128xf32>
    %130 = arith.divf %128, %129 : vector<1x128xf32>
    %131 = math.tanh %125 : vector<1x128xf32>
    %132 = vector.extract_strided_slice %130 {offsets = [0, 0], sizes = [1, 32], strides = [1, 1]} : vector<1x128xf32> to vector<1x32xf32>
    %133 = vector.extract_strided_slice %130 {offsets = [0, 32], sizes = [1, 32], strides = [1, 1]} : vector<1x128xf32> to vector<1x32xf32>
    %134 = vector.extract_strided_slice %131 {offsets = [0, 64], sizes = [1, 32], strides = [1, 1]} : vector<1x128xf32> to vector<1x32xf32>
    %135 = vector.extract_strided_slice %130 {offsets = [0, 96], sizes = [1, 32], strides = [1, 1]} : vector<1x128xf32> to vector<1x32xf32>
    %136 = arith.mulf %133, %119 : vector<1x32xf32>
    %137 = arith.mulf %132, %134 : vector<1x32xf32>
    %138 = arith.addf %136, %137 : vector<1x32xf32>
    %139 = math.tanh %138 : vector<1x32xf32>
    %140 = arith.mulf %135, %139 : vector<1x32xf32>
    %c6 = arith.constant 6 : index
    %c0_30 = arith.constant 0 : index
    %141 = vector.load %arg7[%c6, %c0_30] : memref<8x32xf32, #tpu.memory_space<vmem>>, vector<1x32xf32>
    tpu.vector_store %arg7[%c6, %c0_30], %140 {strides = array<i32>} : memref<8x32xf32, #tpu.memory_space<vmem>>, vector<1x32xf32>,
    %142 = vector.extract_strided_slice %5 {offsets = [7, 0], sizes = [1, 128], strides = [1, 1]} : vector<8x128xf32> to vector<1x128xf32>
    %cst_31 = arith.constant dense<0.000000e+00> : vector<1x128xf32>
    %143 = tpu.matmul %140, %6, %cst_31 {dimension_numbers = #tpu.dot_dimension_numbers<[1], [0], [0], [1], [0, 0, 1, 1], [], []>} : vector<1x32xf32>, vector<32x128xf32>, vector<1x128xf32> -> vector<1x128xf32>
    %144 = arith.addf %142, %143 : vector<1x128xf32>
    %145 = arith.negf %144 : vector<1x128xf32>
    %146 = math.exp %145 : vector<1x128xf32>
    %cst_32 = arith.constant 1.000000e+00 : f32
    %147 = vector.broadcast %cst_32 : f32 to vector<1x128xf32>
    %148 = arith.addf %147, %146 : vector<1x128xf32>
    %149 = arith.divf %147, %148 : vector<1x128xf32>
    %150 = math.tanh %144 : vector<1x128xf32>
    %151 = vector.extract_strided_slice %149 {offsets = [0, 0], sizes = [1, 32], strides = [1, 1]} : vector<1x128xf32> to vector<1x32xf32>
    %152 = vector.extract_strided_slice %149 {offsets = [0, 32], sizes = [1, 32], strides = [1, 1]} : vector<1x128xf32> to vector<1x32xf32>
    %153 = vector.extract_strided_slice %150 {offsets = [0, 64], sizes = [1, 32], strides = [1, 1]} : vector<1x128xf32> to vector<1x32xf32>
    %154 = vector.extract_strided_slice %149 {offsets = [0, 96], sizes = [1, 32], strides = [1, 1]} : vector<1x128xf32> to vector<1x32xf32>
    %155 = arith.mulf %152, %138 : vector<1x32xf32>
    %156 = arith.mulf %151, %153 : vector<1x32xf32>
    %157 = arith.addf %155, %156 : vector<1x32xf32>
    %158 = math.tanh %157 : vector<1x32xf32>
    %159 = arith.mulf %154, %158 : vector<1x32xf32>
    %c7 = arith.constant 7 : index
    %c0_33 = arith.constant 0 : index
    %160 = vector.load %arg7[%c7, %c0_33] : memref<8x32xf32, #tpu.memory_space<vmem>>, vector<1x32xf32>
    tpu.vector_store %arg7[%c7, %c0_33], %159 {strides = array<i32>} : memref<8x32xf32, #tpu.memory_space<vmem>>, vector<1x32xf32>,
    %c0_34 = arith.constant 0 : index
    %c0_35 = arith.constant 0 : index
    %161 = vector.load %arg7[%c0_34, %c0_35] : memref<8x32xf32, #tpu.memory_space<vmem>>, vector<8x32xf32>
    %c0_36 = arith.constant 0 : index
    %c0_37 = arith.constant 0 : index
    %162 = vector.load %arg4[%c0_36, %c0_37] : memref<32x1xf32, #tpu.memory_space<vmem>>, vector<32x1xf32>
    %cst_38 = arith.constant dense<0.000000e+00> : vector<8x1xf32>
    %163 = tpu.matmul %161, %162, %cst_38 {dimension_numbers = #tpu.dot_dimension_numbers<[1], [0], [0], [1], [0, 0, 1, 1], [], []>} : vector<8x32xf32>, vector<32x1xf32>, vector<8x1xf32> -> vector<8x1xf32>
    %c0_39 = arith.constant 0 : index
    %c0_40 = arith.constant 0 : index
    %164 = vector.load %arg5[%c0_39, %c0_40] : memref<1x1xf32, #tpu.memory_space<vmem>>, vector<1x1xf32>
    %165 = vector.broadcast %164 : vector<1x1xf32> to vector<8x1xf32>
    %166 = arith.addf %163, %165 : vector<8x1xf32>
    %c0_41 = arith.constant 0 : index
    %c0_42 = arith.constant 0 : index
    %167 = vector.load %arg6[%c0_41, %c0_42] : memref<8x1xf32, #tpu.memory_space<vmem>>, vector<8x1xf32>
    tpu.vector_store %arg6[%c0_41, %c0_42], %166 {strides = array<i32>} : memref<8x1xf32, #tpu.memory_space<vmem>>, vector<8x1xf32>,
    return
  }
}

</mosaic_0001>

<bundles_post_ra>
// kernel: tpu_custom_call.1
= control target key start
LH: loop header
LB: loop body
LE: loop exit
PB: predicated region body
PF: predicated region fallthrough
CT: control target
= control target key end

     0   :  { %vm38_vm0 = vcmask 1042432   ;;  %v1387_v0 = vmov 0.0|0.0   ;;  %v1388_v3 = vmov 0.0   ;;  %vm34_vm1 = vcmask 23552   ;;  %s1598_s2 = inlined_call_operand.vmem [shape: f32[32,128], index: 2, kind: input, shape index: {}]   ;;  %s1599_s1 = inlined_call_operand.vmem [shape: f32[3,128], index: 1, kind: input, shape index: {}]   ;;  %s1600_s0 = inlined_call_operand.vmem [shape: f32[8,3], index: 0, kind: input, shape index: {}]   ;;  %s1601_s3 = inlined_call_operand.vmem [shape: f32[1,128], index: 3, kind: input, shape index: {}]   ;;  %s1602_s4 = inlined_call_operand.vmem [shape: f32[32,1], index: 4, kind: input, shape index: {}]   ;;  %s1603_s5 = inlined_call_operand.<no memory space> [shape: f32[1,1], index: 5, kind: input, shape index: {}]   ;;  %s1604_s6 = inlined_call_operand.vmem [shape: f32[8,1], index: 6, kind: output, shape index: {}]  }
   0x1   :  { %1264 = vmatprep.subr.bf16.mxu1 %v1387_v0  ;;  %v112_v1 = vld [vmem:[%s1598_s2] sm:$0xff]  ;;  %v113_v2 = vld [vmem:[%s1598_s2 + $0x8] sm:$0xff]  ;;  %1160 = vmatprep.subr.mxu0 %v1388_v3  ;;  %vm1389_vm2 = vmmov 0   ;;  %v114_v7 = vld [vmem:[%s1598_s2 + $0x10] sm:$0xff]  ;;  %vm219_vm3 = vcmask 253952   ;;  %vm116_vm4 = vcmask 261120  }
   0x2   :  { %v26_v4 = vld [vmem:[%s1599_s1] sm:$0x7]  ;;  %v1438_v5 = vpack.c.bf16 %v113_v2, %v112_v1  ;;  %1162 = vmatprep.mubr.msk.f32.mxu0 %vm1389_vm2, %v1388_v3  ;;  %v115_v8 = vld [vmem:[%s1598_s2 + $0x18] sm:$0xff]  ;;  %1173 = vmatprep.mubr.msk.f32.mxu1 %vm1389_vm2, %v1388_v3  ;;  %s1390_s2 = smov 64   ;;  %vm328_vm5 = vcmask 254977   ;;  %vm552_vm6 = vcmask 257027  }
   0x3   :  { %1161 = vmatpush3.msk.msra.mxu0 %vm38_vm0, %v26_v4  ;;  %v25_v6 = vld [vmem:[%s1600_s0] sm:$0xff]  ;;  %v1454_v9 = vpack.c.bf16 %v115_v8, %v114_v7  ;;  %vm776_vm7 = vcmask 259077   ;;  %vm440_vm8 = vcmask 256002   ;;  %vm664_vm9 = vcmask 258052  }
   0x4   :  { %1163 = vmatmul.mubr.msk.f32.vlgmr.msra.gmra.mrb[0].mxu0 %vm34_vm1, %v25_v6  ;;  %1266 = vmatpush3.bf16.msra.mxu1 %v1438_v5  ;;  %v1093_v12 = vld [vmem:[%s1601_s3] ss:$0 sm:$0xff]  ;;  %s1391_s3 = smov 32   ;;  %vm888_vm10 = vcmask 260102   ;;  %vm1000_vm11 = vcmask 261127   ;;  %vm1087_vm12 = vcmask 7168  }
   0x5   :  { %1270 = vmatprep.subr.bf16.mxu0 %v1387_v0  ;;  %1267 = vmatprep.subr.bf16.mxu1 %v1387_v0 }
   0x6   :  { %1272 = vmatpush3.bf16.msra.mxu0 %v1438_v5  ;;  %1184 = vmatprep.mubr.msk.f32.mxu0 %vm1389_vm2, %v1388_v3 }
   0x7   :  { %1273 = vmatprep.subr.bf16.mxu0 %v1387_v0 }
   0x8   :  { %1269 = vmatpush3.bf16.msra.mxu1 %v1454_v9 }
   0x9   :  { %1276 = vmatprep.subr.bf16.mxu1 %v1387_v0 }
   0xa   :  { %1275 = vmatpush3.bf16.msra.mxu0 %v1454_v9 }
   0xb   :  { %1282 = vmatprep.subr.bf16.mxu0 %v1387_v0  ;;  %1174 = vmatmul.mubr.f32.vlgmr.msra.gmra.mrb[0].mxu1 %v1388_v3 }
   0xc   :  { %1278 = vmatpush3.bf16.msra.mxu1 %v1438_v5  ;;  %1195 = vmatprep.mubr.msk.f32.mxu1 %vm1389_vm2, %v1388_v3 }
   0xd   :  { %1279 = vmatprep.subr.bf16.mxu1 %v1387_v0 }
  0x10   :  { %1281 = vmatpush3.bf16.msra.mxu1 %v1454_v9 }
  0x11   :  { %1288 = vmatprep.subr.bf16.mxu1 %v1387_v0 }
  0xd7   :  { %v108_v10 = vpop.f32.mrb[0].mxu0 }
  0xd8   :  { %v1164_v11 = vpop.f32.mrb[1].mxu0  ;;  %v1476_v13 = vadd.f32 %v1093_v12, %v108_v10 }
  0xde   :  { %v186_v14 = vpop.f32.mrb[0].mxu1 }
  0xdf   :  { %v190_v15 = vadd.f32 %v186_v14, %v1476_v13  ;;  %v1175_v16 = vpop.f32.mrb[1].mxu1 }
  0xe1   :  { %1323 = vtanh.f32 %v190_v15  ;;  %v1096_v18 = vmul.f32 -1.442695, %v190_v15 }
  0xe3   :  { %1325 = vpow2.f32 %v1096_v18 }
  0xeb   :  { %v1324_v17 = vpop.eup %1323 }
  0xec   :  { %200 = vrot.lane.b32.xlu0 %v1324_v17, %s1390_s2 }
  0xed   :  { %v1326_v19 = vpop.eup %1325 }
  0xee   :  { %v194_v20 = vadd.f32 1.0, %v1326_v19 }
  0xf0   :  { %1327 = vrcp.f32 %v194_v20 }
  0xfa   :  { %v1328_v21 = vpop.eup %1327 }
  0xfb   :  { %v198_v24 = vmul.f32 0.0, %v1328_v21 }
 0x15e   :  { %v201_v22 = vpop.permute.xlu0 %200 }
 0x15f   :  { %v203_v23 = vmul.f32 %v1328_v21, %v201_v22 }
 0x161   :  { %205 = vrot.lane.b32.xlu0 %v203_v23, %s1391_s3 }
 0x1d3   :  { %v206_v25 = vpop.permute.xlu0 %205 }
 0x1d4   :  { %v208_v26 = vadd.f32 %v206_v25, %v198_v24 }
 0x1d6   :  { %1329 = vtanh.f32 %v208_v26  ;;  %v305_v42 = vrot.slane %v208_v26, 7 }
 0x1e0   :  { %v1330_v27 = vpop.eup %1329 }
 0x1e1   :  { %211 = vrot.lane.b32.xlu1 %v1330_v27, %s1390_s2 }
 0x253   :  { %v212_v28 = vpop.permute.xlu1 %211 }
 0x254   :  { %v214_v29 = vmul.f32 %v1328_v21, %v212_v28 }
 0x256   :  { %216 = vrot.lane.b32.xlu1 %v214_v29, %s1391_s3 }
 0x2c8   :  { %v217_v30 = vpop.permute.xlu1 %216 }
 0x2c9   :  { %220 = vst.msk [vmem:[#allocation2] sm:$0x1] %vm219_vm3, %v217_v30  ;;  %1185 = vmatmul.mubr.msk.f32.vlgmr.msra.gmra.mrb[2].mxu0 %vm116_vm4, %v217_v30 }
 0x2ca   :  { %1284 = vmatpush3.bf16.msra.mxu0 %v1438_v5  ;;  %1206 = vmatprep.mubr.msk.f32.mxu0 %vm1389_vm2, %v1388_v3 }
 0x2cb   :  { %1285 = vmatprep.subr.bf16.mxu0 %v1387_v0 }
 0x2ce   :  { %1287 = vmatpush3.bf16.msra.mxu0 %v1454_v9 }
 0x2cf   :  { %1294 = vmatprep.subr.bf16.mxu0 %v1387_v0 }
 0x39c   :  { %v289_v31 = vpop.f32.mrb[2].mxu0 }
 0x39d   :  { %v294_v32 = vrot.slane %v289_v31, 7  ;;  %v1186_v33 = vpop.f32.mrb[3].mxu0 }
 0x39f   :  { %v296_v34 = vadd.f32 %v294_v32, %v1476_v13 }
 0x3a1   :  { %1331 = vtanh.f32 %v296_v34  ;;  %v1098_v36 = vmul.f32 -1.442695, %v296_v34 }
 0x3a3   :  { %1333 = vpow2.f32 %v1098_v36 }
 0x3ab   :  { %v1332_v35 = vpop.eup %1331 }
 0x3ac   :  { %309 = vrot.lane.b32.xlu0 %v1332_v35, %s1390_s2 }
 0x3ad   :  { %v1334_v37 = vpop.eup %1333 }
 0x3ae   :  { %v300_v38 = vadd.f32 1.0, %v1334_v37 }
 0x3b0   :  { %1335 = vrcp.f32 %v300_v38 }
 0x3ba   :  { %v1336_v39 = vpop.eup %1335 }
 0x3bb   :  { %v307_v43 = vmul.f32 %v1336_v39, %v305_v42 }
 0x41e   :  { %v310_v40 = vpop.permute.xlu0 %309 }
 0x41f   :  { %v312_v41 = vmul.f32 %v1336_v39, %v310_v40 }
 0x421   :  { %314 = vrot.lane.b32.xlu1 %v312_v41, %s1391_s3 }
 0x493   :  { %v315_v44 = vpop.permute.xlu1 %314 }
 0x494   :  { %v317_v45 = vadd.f32 %v315_v44, %v307_v43 }
 0x496   :  { %1337 = vtanh.f32 %v317_v45  ;;  %v417_v62 = vrot.slane %v317_v45, 7 }
 0x4a0   :  { %v1338_v46 = vpop.eup %1337 }
 0x4a1   :  { %320 = vrot.lane.b32.xlu0 %v1338_v46, %s1390_s2 }
 0x513   :  { %v321_v47 = vpop.permute.xlu0 %320 }
 0x514   :  { %v1494_v48 = vmul.f32 %v1336_v39, %v321_v47 }
 0x516   :  { %v330_v49 = vrot.slane %v1494_v48, 1 }
 0x518   :  { %331 = vrot.lane.b32.xlu1 %v330_v49, %s1391_s3 }
 0x58a   :  { %v332_v50 = vpop.permute.xlu1 %331 }
 0x58b   :  { %1196 = vmatmul.mubr.msk.f32.vlgmr.msra.gmra.mrb[2].mxu1 %vm116_vm4, %v332_v50 }
 0x58c   :  { %1290 = vmatpush3.bf16.msra.mxu1 %v1438_v5  ;;  %1217 = vmatprep.mubr.msk.f32.mxu1 %vm1389_vm2, %v1388_v3 }
 0x58d   :  { %1291 = vmatprep.subr.bf16.mxu1 %v1387_v0 }
 0x590   :  { %1293 = vmatpush3.bf16.msra.mxu1 %v1454_v9 }
 0x591   :  { %1300 = vmatprep.subr.bf16.mxu1 %v1387_v0 }
 0x65e   :  { %v401_v51 = vpop.f32.mrb[2].mxu1 }
 0x65f   :  { %v406_v52 = vrot.slane %v401_v51, 6  ;;  %v1197_v53 = vpop.f32.mrb[3].mxu1 }
 0x661   :  { %v408_v54 = vadd.f32 %v406_v52, %v1476_v13 }
 0x663   :  { %1339 = vtanh.f32 %v408_v54  ;;  %v1100_v56 = vmul.f32 -1.442695, %v408_v54 }
 0x665   :  { %1341 = vpow2.f32 %v1100_v56 }
 0x66d   :  { %v1340_v55 = vpop.eup %1339 }
 0x66e   :  { %421 = vrot.lane.b32.xlu0 %v1340_v55, %s1390_s2 }
 0x66f   :  { %v1342_v57 = vpop.eup %1341 }
 0x670   :  { %v412_v58 = vadd.f32 1.0, %v1342_v57 }
 0x672   :  { %1343 = vrcp.f32 %v412_v58 }
 0x67c   :  { %v1344_v59 = vpop.eup %1343 }
 0x67d   :  { %v419_v63 = vmul.f32 %v1344_v59, %v417_v62 }
 0x6e0   :  { %v422_v60 = vpop.permute.xlu0 %421 }
 0x6e1   :  { %v424_v61 = vmul.f32 %v1344_v59, %v422_v60 }
 0x6e3   :  { %426 = vrot.lane.b32.xlu1 %v424_v61, %s1391_s3 }
 0x755   :  { %v427_v1 = vpop.permute.xlu1 %426 }
 0x756   :  { %v429_v2 = vadd.f32 %v427_v1, %v419_v63 }
 0x758   :  { %1345 = vtanh.f32 %v429_v2  ;;  %v529_v23 = vrot.slane %v429_v2, 7 }
 0x762   :  { %v1346_v4 = vpop.eup %1345 }
 0x763   :  { %432 = vrot.lane.b32.xlu0 %v1346_v4, %s1390_s2 }
 0x7d5   :  { %v433_v6 = vpop.permute.xlu0 %432 }
 0x7d6   :  { %v1509_v7 = vmul.f32 %v1344_v59, %v433_v6 }
 0x7d8   :  { %v442_v8 = vrot.slane %v1509_v7, 2 }
 0x7da   :  { %443 = vrot.lane.b32.xlu1 %v442_v8, %s1391_s3 }
 0x84c   :  { %v444_v10 = vpop.permute.xlu1 %443 }
 0x84d   :  { %1207 = vmatmul.mubr.msk.f32.vlgmr.msra.gmra.mrb[4].mxu0 %vm116_vm4, %v444_v10 }
 0x84e   :  { %1296 = vmatpush3.bf16.msra.mxu0 %v1438_v5  ;;  %1228 = vmatprep.mubr.msk.f32.mxu0 %vm1389_vm2, %v1388_v3 }
 0x84f   :  { %1297 = vmatprep.subr.bf16.mxu0 %v1387_v0 }
 0x852   :  { %1299 = vmatpush3.bf16.msra.mxu0 %v1454_v9 }
 0x853   :  { %1306 = vmatprep.subr.bf16.mxu0 %v1387_v0 }
 0x920   :  { %v513_v11 = vpop.f32.mrb[4].mxu0 }
 0x921   :  { %v518_v12 = vrot.slane %v513_v11, 5  ;;  %v1208_v14 = vpop.f32.mrb[5].mxu0 }
 0x923   :  { %v520_v15 = vadd.f32 %v518_v12, %v1476_v13 }
 0x925   :  { %1347 = vtanh.f32 %v520_v15  ;;  %v1102_v17 = vmul.f32 -1.442695, %v520_v15 }
 0x927   :  { %1349 = vpow2.f32 %v1102_v17 }
 0x92f   :  { %v1348_v16 = vpop.eup %1347 }
 0x930   :  { %533 = vrot.lane.b32.xlu0 %v1348_v16, %s1390_s2 }
 0x931   :  { %v1350_v18 = vpop.eup %1349 }
 0x932   :  { %v524_v19 = vadd.f32 1.0, %v1350_v18 }
 0x934   :  { %1351 = vrcp.f32 %v524_v19 }
 0x93e   :  { %v1352_v20 = vpop.eup %1351 }
 0x93f   :  { %v531_v24 = vmul.f32 %v1352_v20, %v529_v23 }
 0x9a2   :  { %v534_v21 = vpop.permute.xlu0 %533 }
 0x9a3   :  { %v536_v22 = vmul.f32 %v1352_v20, %v534_v21 }
 0x9a5   :  { %538 = vrot.lane.b32.xlu1 %v536_v22, %s1391_s3 }
 0xa17   :  { %v539_v25 = vpop.permute.xlu1 %538 }
 0xa18   :  { %v541_v26 = vadd.f32 %v539_v25, %v531_v24 }
 0xa1a   :  { %1353 = vtanh.f32 %v541_v26  ;;  %v641_v43 = vrot.slane %v541_v26, 7 }
 0xa24   :  { %v1354_v27 = vpop.eup %1353 }
 0xa25   :  { %544 = vrot.lane.b32.xlu0 %v1354_v27, %s1390_s2 }
 0xa97   :  { %v545_v28 = vpop.permute.xlu0 %544 }
 0xa98   :  { %v1524_v29 = vmul.f32 %v1352_v20, %v545_v28 }
 0xa9a   :  { %v554_v30 = vrot.slane %v1524_v29, 3 }
 0xa9c   :  { %555 = vrot.lane.b32.xlu1 %v554_v30, %s1391_s3 }
 0xb0e   :  { %v556_v31 = vpop.permute.xlu1 %555 }
 0xb0f   :  { %1218 = vmatmul.mubr.msk.f32.vlgmr.msra.gmra.mrb[4].mxu1 %vm116_vm4, %v556_v31 }
 0xb10   :  { %1302 = vmatpush3.bf16.msra.mxu1 %v1438_v5  ;;  %1239 = vmatprep.mubr.msk.f32.mxu1 %vm1389_vm2, %v1388_v3 }
 0xb11   :  { %1303 = vmatprep.subr.bf16.mxu1 %v1387_v0 }
 0xb14   :  { %1305 = vmatpush3.bf16.msra.mxu1 %v1454_v9 }
 0xb15   :  { %1312 = vmatprep.subr.bf16.mxu1 %v1387_v0 }
 0xbe2   :  { %v625_v32 = vpop.f32.mrb[4].mxu1 }
 0xbe3   :  { %v630_v33 = vrot.slane %v625_v32, 4  ;;  %v1219_v34 = vpop.f32.mrb[5].mxu1 }
 0xbe5   :  { %v632_v35 = vadd.f32 %v630_v33, %v1476_v13 }
 0xbe7   :  { %1355 = vtanh.f32 %v632_v35  ;;  %v1104_v37 = vmul.f32 -1.442695, %v632_v35 }
 0xbe9   :  { %1357 = vpow2.f32 %v1104_v37 }
 0xbf1   :  { %v1356_v36 = vpop.eup %1355 }
 0xbf2   :  { %645 = vrot.lane.b32.xlu0 %v1356_v36, %s1390_s2 }
 0xbf3   :  { %v1358_v38 = vpop.eup %1357 }
 0xbf4   :  { %v636_v39 = vadd.f32 1.0, %v1358_v38 }
 0xbf6   :  { %1359 = vrcp.f32 %v636_v39 }
 0xc00   :  { %v1360_v40 = vpop.eup %1359 }
 0xc01   :  { %v643_v44 = vmul.f32 %v1360_v40, %v641_v43 }
 0xc64   :  { %v646_v41 = vpop.permute.xlu0 %645 }
 0xc65   :  { %v648_v42 = vmul.f32 %v1360_v40, %v646_v41 }
 0xc67   :  { %650 = vrot.lane.b32.xlu1 %v648_v42, %s1391_s3 }
 0xcd9   :  { %v651_v45 = vpop.permute.xlu1 %650 }
 0xcda   :  { %v653_v46 = vadd.f32 %v651_v45, %v643_v44 }
 0xcdc   :  { %1361 = vtanh.f32 %v653_v46 }
 0xce6   :  { %v1362_v47 = vpop.eup %1361 }
 0xce7   :  { %656 = vrot.lane.b32.xlu0 %v1362_v47, %s1390_s2 }
 0xd59   :  { %v657_v49 = vpop.permute.xlu0 %656 }
 0xd5a   :  { %v1539_v50 = vmul.f32 %v1360_v40, %v657_v49 }
 0xd5c   :  { %v666_v51 = vrot.slane %v1539_v50, 4 }
 0xd5e   :  { %667 = vrot.lane.b32.xlu1 %v666_v51, %s1391_s3 }
 0xdd0   :  { %v668_v52 = vpop.permute.xlu1 %667 }
 0xdd1   :  { %1229 = vmatmul.mubr.msk.f32.vlgmr.msra.gmra.mrb[6].mxu0 %vm116_vm4, %v668_v52 }
 0xdd2   :  { %1308 = vmatpush3.bf16.msra.mxu0 %v1438_v5  ;;  %1250 = vmatprep.mubr.msk.f32.mxu0 %vm1389_vm2, %v1388_v3 }
 0xdd3   :  { %1309 = vmatprep.subr.bf16.mxu0 %v1387_v0 }
 0xdd6   :  { %1311 = vmatpush3.bf16.msra.mxu0 %v1454_v9  ;;  %v753_v9 = vrot.slane %v653_v46, 7 }
 0xea4   :  { %v737_v53 = vpop.f32.mrb[6].mxu0 }
 0xea5   :  { %v742_v54 = vrot.slane %v737_v53, 3  ;;  %v1230_v55 = vpop.f32.mrb[7].mxu0 }
 0xea6   :  { %v11_v55 = vstv %s1603_s5 }
 0xea7   :  { %v744_v56 = vadd.f32 %v742_v54, %v1476_v13  ;;  %v1005_v54 = vld [vmem:[%s1602_s4 + $0x10] sm:$0xff]  ;;  %12 = vst [vmem:[#allocation3] sm:$0x1] %v11_v55 }
 0xea9   :  { %1363 = vtanh.f32 %v744_v56  ;;  %v1106_v58 = vmul.f32 -1.442695, %v744_v56 }
 0xeab   :  { %1365 = vpow2.f32 %v1106_v58 }
 0xeb3   :  { %v1364_v57 = vpop.eup %1363 }
 0xeb4   :  { %757 = vrot.lane.b32.xlu0 %v1364_v57, %s1390_s2 }
 0xeb5   :  { %v1366_v59 = vpop.eup %1365 }
 0xeb6   :  { %v748_v5 = vadd.f32 1.0, %v1366_v59 }
 0xeb8   :  { %1367 = vrcp.f32 %v748_v5 }
 0xec2   :  { %v1368_v60 = vpop.eup %1367 }
 0xec3   :  { %v755_v63 = vmul.f32 %v1368_v60, %v753_v9 }
 0xf26   :  { %v758_v61 = vpop.permute.xlu0 %757 }
 0xf27   :  { %v760_v62 = vmul.f32 %v1368_v60, %v758_v61  ;;  %v1111_v61 = vld [vmem:[#allocation3] ss:$0 sm:$0xff] }
 0xf29   :  { %762 = vrot.lane.b32.xlu1 %v760_v62, %s1391_s3 }
 0xf9b   :  { %v763_v1 = vpop.permute.xlu1 %762 }
 0xf9c   :  { %v765_v2 = vadd.f32 %v763_v1, %v755_v63 }
 0xf9e   :  { %1369 = vtanh.f32 %v765_v2 }
 0xfa8   :  { %v1370_v4 = vpop.eup %1369 }
 0xfa9   :  { %768 = vrot.lane.b32.xlu0 %v1370_v4, %s1390_s2 }
0x101b   :  { %v769_v6 = vpop.permute.xlu0 %768 }
0x101c   :  { %v771_v8 = vmul.f32 %v1368_v60, %v769_v6 }
0x101e   :  { %v778_v10 = vrot.slane %v771_v8, 5 }
0x1020   :  { %779 = vrot.lane.b32.xlu1 %v778_v10, %s1391_s3 }
0x1092   :  { %v780_v11 = vpop.permute.xlu1 %779 }
0x1093   :  { %1240 = vmatmul.mubr.msk.f32.vlgmr.msra.gmra.mrb[6].mxu1 %vm116_vm4, %v780_v11 }
0x1094   :  { %1261 = vmatprep.mubr.msk.f32.mxu1 %vm1389_vm2, %v1388_v3  ;;  %v865_v3 = vrot.slane %v765_v2, 7 }
0x1166   :  { %v849_v12 = vpop.f32.mrb[6].mxu1 }
0x1167   :  { %v854_v14 = vrot.slane %v849_v12, 2  ;;  %v1241_v15 = vpop.f32.mrb[7].mxu1 }
0x1169   :  { %v856_v16 = vadd.f32 %v854_v14, %v1476_v13 }
0x116b   :  { %1371 = vtanh.f32 %v856_v16  ;;  %v1108_v18 = vmul.f32 -1.442695, %v856_v16 }
0x116d   :  { %1373 = vpow2.f32 %v1108_v18 }
0x1175   :  { %v1372_v17 = vpop.eup %1371 }
0x1176   :  { %869 = vrot.lane.b32.xlu0 %v1372_v17, %s1390_s2 }
0x1177   :  { %v1374_v19 = vpop.eup %1373 }
0x1178   :  { %v860_v20 = vadd.f32 1.0, %v1374_v19 }
0x117a   :  { %1375 = vrcp.f32 %v860_v20 }
0x1184   :  { %v1376_v21 = vpop.eup %1375 }
0x1185   :  { %v867_v24 = vmul.f32 %v1376_v21, %v865_v3 }
0x11e8   :  { %v870_v22 = vpop.permute.xlu0 %869 }
0x11e9   :  { %v872_v23 = vmul.f32 %v1376_v21, %v870_v22 }
0x11eb   :  { %874 = vrot.lane.b32.xlu1 %v872_v23, %s1391_s3 }
0x125d   :  { %v875_v25 = vpop.permute.xlu1 %874 }
0x125e   :  { %v877_v26 = vadd.f32 %v875_v25, %v867_v24 }
0x1260   :  { %1377 = vtanh.f32 %v877_v26 }
0x126a   :  { %v1378_v27 = vpop.eup %1377 }
0x126b   :  { %880 = vrot.lane.b32.xlu0 %v1378_v27, %s1390_s2 }
0x12dd   :  { %v881_v28 = vpop.permute.xlu0 %880 }
0x12de   :  { %v883_v30 = vmul.f32 %v1376_v21, %v881_v28 }
0x12e0   :  { %v890_v31 = vrot.slane %v883_v30, 6 }
0x12e2   :  { %891 = vrot.lane.b32.xlu1 %v890_v31, %s1391_s3 }
0x1354   :  { %v892_v32 = vpop.permute.xlu1 %891 }
0x1355   :  { %1251 = vmatmul.mubr.msk.f32.vlgmr.msra.gmra.mrb[8].mxu0 %vm116_vm4, %v892_v32 }
0x1428   :  { %v961_v33 = vpop.f32.mrb[8].mxu0 }
0x1429   :  { %v966_v34 = vrot.slane %v961_v33, 1  ;;  %v1252_v35 = vpop.f32.mrb[9].mxu0 }
0x142b   :  { %v968_v36 = vadd.f32 %v966_v34, %v1476_v13  ;;  %v977_v13 = vrot.slane %v877_v26, 7 }
0x142d   :  { %1379 = vtanh.f32 %v968_v36  ;;  %v1110_v38 = vmul.f32 -1.442695, %v968_v36 }
0x142f   :  { %1381 = vpow2.f32 %v1110_v38 }
0x1437   :  { %v1380_v37 = vpop.eup %1379 }
0x1438   :  { %981 = vrot.lane.b32.xlu0 %v1380_v37, %s1390_s2 }
0x1439   :  { %v1382_v39 = vpop.eup %1381 }
0x143a   :  { %v972_v40 = vadd.f32 1.0, %v1382_v39 }
0x143c   :  { %1383 = vrcp.f32 %v972_v40 }
0x1446   :  { %v1384_v41 = vpop.eup %1383 }
0x1447   :  { %v979_v44 = vmul.f32 %v1384_v41, %v977_v13 }
0x14aa   :  { %v982_v42 = vpop.permute.xlu0 %981 }
0x14ab   :  { %v984_v43 = vmul.f32 %v1384_v41, %v982_v42 }
0x14ad   :  { %986 = vrot.lane.b32.xlu1 %v984_v43, %s1391_s3 }
0x14b1   :  { %325 = vrot.lane.b32.xlu1 %v1494_v48, %s1391_s3  ;;  %v1003_v48 = vld [vmem:[%s1602_s4] sm:$0xff] }
0x14b5   :  { %549 = vrot.lane.b32.xlu1 %v1524_v29, %s1391_s3  ;;  %v1004_v29 = vld [vmem:[%s1602_s4 + $0x8] sm:$0xff] }
0x14b6   :  { %v1313_v53 = vpack.c.bf16 %v1004_v29, %v1003_v48 }
0x14b8   :  { %1314 = vmatpush3.bf16.msra.mxu1 %v1313_v53 }
0x14b9   :  { %773 = vrot.lane.b32.xlu1 %v771_v8, %s1391_s3  ;;  %1315 = vmatprep.subr.bf16.mxu1 %v1387_v0 }
0x151f   :  { %v987_v45 = vpop.permute.xlu1 %986 }
0x1520   :  { %v989_v46 = vadd.f32 %v987_v45, %v979_v44 }
0x1522   :  { %1385 = vtanh.f32 %v989_v46 }
0x1523   :  { %v326_v47 = vpop.permute.xlu1 %325 }
0x1524   :  { %329 = vst.msk [vmem:[#allocation2] sm:$0x2] %vm328_vm5, %v326_v47 }
0x1527   :  { %v550_v49 = vpop.permute.xlu1 %549 }
0x1528   :  { %553 = vst.msk [vmem:[#allocation2] sm:$0x8] %vm552_vm6, %v550_v49 }
0x152b   :  { %v774_v51 = vpop.permute.xlu1 %773 }
0x152c   :  { %v1386_v52 = vpop.eup %1385  ;;  %777 = vst.msk [vmem:[#allocation2] sm:$0x20] %vm776_vm7, %v774_v51 }
0x152d   :  { %992 = vrot.lane.b32.xlu0 %v1386_v52, %s1390_s2 }
0x1531   :  { %437 = vrot.lane.b32.xlu0 %v1509_v7, %s1391_s3  ;;  %v1006_v7 = vld [vmem:[%s1602_s4 + $0x18] sm:$0xff] }
0x1535   :  { %661 = vrot.lane.b32.xlu0 %v1539_v50, %s1391_s3  ;;  %v1316_v50 = vpack.c.bf16 %v1006_v7, %v1005_v54 }
0x1537   :  { %1317 = vmatpush3.bf16.msra.mxu1 %v1316_v50 }
0x1539   :  { %885 = vrot.lane.b32.xlu0 %v883_v30, %s1391_s3 }
0x159f   :  { %v993_v56 = vpop.permute.xlu0 %992 }
0x15a0   :  { %v995_v57 = vmul.f32 %v1384_v41, %v993_v56 }
0x15a2   :  { %997 = vrot.lane.b32.xlu1 %v995_v57, %s1391_s3 }
0x15a3   :  { %v438_v58 = vpop.permute.xlu0 %437 }
0x15a4   :  { %441 = vst.msk [vmem:[#allocation2] sm:$0x4] %vm440_vm8, %v438_v58 }
0x15a7   :  { %v662_v59 = vpop.permute.xlu0 %661 }
0x15a8   :  { %665 = vst.msk [vmem:[#allocation2] sm:$0x10] %vm664_vm9, %v662_v59 }
0x15ab   :  { %v886_v5 = vpop.permute.xlu0 %885 }
0x15ac   :  { %889 = vst.msk [vmem:[#allocation2] sm:$0x40] %vm888_vm10, %v886_v5 }
0x1614   :  { %v998_v0 = vpop.permute.xlu1 %997 }
0x1615   :  { %1001 = vst.msk [vmem:[#allocation2] sm:$0x80] %vm1000_vm11, %v998_v0 }
0x161c   :  { %v1002_v60 = vld [vmem:[#allocation2] sm:$0xff] }
0x161d   :  { %1262 = vmatmul.mubr.msk.f32.vlgmr.msra.gmra.mrb[8].mxu1 %vm116_vm4, %v1002_v60 }
0x16f0   :  { %v1083_v62 = vpop.f32.mrb[8].mxu1 }
0x16f1   :  { %v1084_v9 = vadd.f32 %v1111_v61, %v1083_v62  ;;  %v1263_v63 = vpop.f32.mrb[9].mxu1 }
0x16f3   :  { %1088 = vst.msk [vmem:[%s1604_s6] sm:$0xff] %vm1087_vm12, %v1084_v9 }

</bundles_post_ra>
